<compile_context>
chip_gen: v6e
topology: v6e:2x2x1
jax: 0.10.0
libtpu: 0.0.40
codegen_flags: <defaults>
</compile_context>

<pallas_src>
import functools

import jax
import jax.numpy as jnp
from jax.experimental import pallas as pl
from jax.experimental.pallas import tpu as pltpu


# ---------------------------------------------------------------------------
# Wrapper-side prep (plain XLA, done once — not per grid step)
# ---------------------------------------------------------------------------
def _effective_prop_matrix(adj, gdep, alpha):
    """A_eff (f32) such that h_gdep[v] = sum_w A_eff[v, w] * x[w] (exact fold)."""
    V = adj.shape[0]
    adj = adj.astype(jnp.float32) + jnp.eye(V, dtype=jnp.float32)
    a = adj / jnp.sum(adj, axis=1, keepdims=True)            # row-normalized
    beta = (1.0 - alpha) * a
    acc = jnp.zeros((V, V), jnp.float32)
    term = jnp.eye(V, dtype=jnp.float32)
    for _ in range(gdep):                                    # gdep is static/small
        acc = acc + term
        term = beta @ term
    return alpha * acc + term                                # (V, V) f32


def _round_up(x, m):
    return ((x + m - 1) // m) * m


def _cdiv(a, b):
    return -(-a // b)


def _vmem_budget():
    """Generation-aware (vmem_limit_bytes, per-step block-budget).

    v7x has 64 MiB VMEM per TensorCore, v5e/v6e have 128 MiB.  Keep ~25%
    headroom for compiler temporaries and size blocks against half the limit.
    """
    try:
        cap = int(pltpu.get_tpu_info().vmem_capacity_bytes)
    except Exception:
        cap = 64 * 1024 * 1024                        # conservative: assume v7x
    limit = min((cap * 3) // 4, 96 * 1024 * 1024)     # 48 MiB (v7x) / 96 MiB (v5e/v6e)
    return limit, limit // 2


def _pick_tile(B, candidates, fits):
    """Largest tile that fits the budget, preferring >=2 grid steps (v7x megacore
    needs a shardable axis) and <=25% padding waste (kernel is HBM-bound, padded
    rows are pure wasted traffic).  `candidates` must be descending."""
    fitting = [t for t in candidates if fits(t)]
    if not fitting:
        return candidates[-1]
    multi = [t for t in fitting if _cdiv(B, t) >= 2]
    for t in multi:
        if _cdiv(B, t) * t - B <= max(B // 4, 0):
            return t
    if multi:
        return multi[0]
    return min(fitting)                               # tiny B: minimize padding


# ---------------------------------------------------------------------------
# Kernels
# ---------------------------------------------------------------------------
def _prop_kernel_nodes_on_lanes(x_ref, at_ref, w_ref, b_ref, o_ref,
                                *, c_in, c_out, mix_first):
    """Layout: x (C_in, TB, V), A_eff^T (V, TN), out (C_out, TB, TN); V on lanes."""
    at = at_ref[...]                                  # compute dtype (bf16/f32)
    tb = o_ref.shape[1]
    if mix_first:
        # 1x1-conv channel mix first (mix and propagation commute exactly), so
        # only C_out (< C_in) channels hit the MXU.  Mix accumulates in f32.
        xs = [x_ref[c].astype(jnp.float32) for c in range(c_in)]
        for o in range(c_out):
            acc = xs[0] * w_ref[o, 0]
            for c in range(1, c_in):
                acc = acc + xs[c] * w_ref[o, c]
            h = jnp.dot(acc.astype(at.dtype), at, preferred_element_type=jnp.float32)
            o_ref[o] = (h + b_ref[o]).astype(o_ref.dtype)
    else:
        # Single fused MXU matmul: (C_in*TB, V) @ (V, TN).  TB%8==0 and V%128==0,
        # so the leading-dim merge is a zero-cost relayout; A_eff^T stays resident
        # in the MXU weight registers for one long M = C_in*TB pass.
        xf = x_ref[...].reshape(c_in * tb, x_ref.shape[2])
        h = jnp.dot(xf.astype(at.dtype), at, preferred_element_type=jnp.float32)
        for o in range(c_out):
            acc = h[0:tb] * w_ref[o, 0]
            for c in range(1, c_in):
                acc = acc + h[c * tb:(c + 1) * tb] * w_ref[o, c]
            o_ref[o] = (acc + b_ref[o]).astype(o_ref.dtype)


def _prop_kernel_batch_on_lanes(x_ref, a_ref, w_ref, b_ref, o_ref,
                                *, c_in, c_out, mix_first):
    """Layout: x (C_in, V, TB), A_eff (V, V), out (C_out, V, TB); fused batch on
    lanes (for V << 128 every load/store is still lane-dense)."""
    a = a_ref[...]
    if mix_first:
        xs = [x_ref[c].astype(jnp.float32) for c in range(c_in)]
        for o in range(c_out):
            acc = xs[0] * w_ref[o, 0]
            for c in range(1, c_in):
                acc = acc + xs[c] * w_ref[o, c]
            h = jnp.dot(a, acc.astype(a.dtype), preferred_element_type=jnp.float32)
            o_ref[o] = (h + b_ref[o]).astype(o_ref.dtype)
    else:
        hs = [jnp.dot(a, x_ref[c].astype(a.dtype), preferred_element_type=jnp.float32)
              for c in range(c_in)]
        for o in range(c_out):
            acc = hs[0] * w_ref[o, 0]
            for c in range(1, c_in):
                acc = acc + hs[c] * w_ref[o, c]
            o_ref[o] = (acc + b_ref[o]).astype(o_ref.dtype)


# ---------------------------------------------------------------------------
# Wrapper
# ---------------------------------------------------------------------------
def prop_forward(x, adj, weight, bias, *, gdep, alpha,
                 compute_dtype=jnp.bfloat16, out_dtype=None):
    """x: (N, C_in, V, L) NCHW; adj: (V, V); weight: (C_out, C_in, 1, 1); bias: (C_out,).

    compute_dtype: dtype of the MXU operands (activations + A_eff).  bf16 halves
    HBM read traffic (the kernel is HBM-bound); accumulation is always f32.
    out_dtype: kernel output dtype (defaults to x.dtype; pass bf16 to also halve
    the output write traffic).
    """
    N, C_in, V, L = x.shape
    C_out = weight.shape[0]
    B = N * L
    out_dtype = x.dtype if out_dtype is None else out_dtype
    mix_first = C_out < C_in                          # propagate min(C_in, C_out) channels

    io_bytes = jnp.dtype(compute_dtype).itemsize
    out_bytes = jnp.dtype(out_dtype).itemsize
    a_bytes = io_bytes

    a_eff = _effective_prop_matrix(adj, gdep, alpha)          # (V, V) f32, exact
    w2 = weight.reshape(C_out, C_in).astype(jnp.float32)      # SMEM scalar table
    b1 = bias.astype(jnp.float32)

    vmem_limit, budget = _vmem_budget()
    interm_ch = C_in + C_out + 2   # conservative multiplier for f32 intermediates

    if V >= 128:
        # ---------------- nodes-on-lanes layout (V on lanes) ----------------
        # Pad V to a multiple of 128 (lane-dense loads/stores on all gens; 256
        # alignment would only help MXU fill but adds padded HBM traffic, and
        # this kernel is HBM-bound).
        V_pad = _round_up(V, 128)
        a_pad = jnp.zeros((V_pad, V_pad), jnp.float32).at[:V, :V].set(a_eff)
        a_op = a_pad.T.astype(compute_dtype)                  # A_eff^T, (V_pad, V_pad)

        # Output-node tile TN: keep the whole A_eff^T resident (single-buffered)
        # when it is cheap, otherwise tile it (double-buffered) for very large V.
        if V_pad * V_pad * a_bytes <= budget // 3:
            TN = V_pad
        else:
            TN = 128
            for m in range(V_pad // 128, 0, -1):
                tn = m * 128
                if V_pad % tn == 0 and V_pad * tn * a_bytes * 2 <= budget // 3:
                    TN = tn
                    break
        n_j = V_pad // TN
        a_nbuf = 1 if n_j == 1 else 2

        def fits(tb):
            xb_b = 2 * C_in * tb * V_pad * io_bytes           # 2x (pipelined) input
            ob_b = 2 * C_out * tb * TN * out_bytes            # 2x (pipelined) output
            ab_b = a_nbuf * V_pad * TN * a_bytes              # A_eff^T buffers
            tmp = interm_ch * tb * max(V_pad, TN) * 4         # f32 dot/mix temporaries
            return xb_b + ob_b + ab_b + tmp <= budget

        TB = _pick_tile(B, [2048, 1024, 512, 256, 128, 64, 32, 16, 8], fits)
        B_pad = _round_up(B, TB)
        n_i = B_pad // TB

        # One re-layout: (N, C_in, V, L) -> (C_in, B, V); pad + cast once.
        xb = jnp.transpose(x, (1, 0, 3, 2)).reshape(C_in, B, V).astype(compute_dtype)
        xb = jnp.pad(xb, ((0, 0), (0, B_pad - B), (0, V_pad - V)))

        if n_j == 1:
            # Constant block index across the whole grid -> whole-array VMEM
            # operand: copied in once, single-buffered (no 2x V^2 waste).
            a_spec = pl.BlockSpec(memory_space=pltpu.MemorySpace.VMEM)
        else:
            a_spec = pl.BlockSpec((V_pad, TN), lambda i, j: (0, j))

        kernel = functools.partial(_prop_kernel_nodes_on_lanes,
                                   c_in=C_in, c_out=C_out, mix_first=mix_first)
        out = pl.pallas_call(
            kernel,
            out_shape=jax.ShapeDtypeStruct((C_out, B_pad, V_pad), out_dtype),
            grid_spec=pltpu.PrefetchScalarGridSpec(
                num_scalar_prefetch=0,
                grid=(n_i, n_j),                              # j innermost: x block reused
                in_specs=[
                    pl.BlockSpec((C_in, TB, V_pad), lambda i, j: (0, i, 0)),
                    a_spec,
                    pl.BlockSpec(memory_space=pltpu.MemorySpace.SMEM),   # conv weight
                    pl.BlockSpec(memory_space=pltpu.MemorySpace.SMEM),   # conv bias
                ],
                out_specs=pl.BlockSpec((C_out, TB, TN), lambda i, j: (0, i, j)),
            ),
            compiler_params=pltpu.CompilerParams(
                dimension_semantics=("parallel", "parallel"),
                vmem_limit_bytes=vmem_limit,
            ),
        )(xb, a_op, w2, b1)

        out = out[:, :B, :V].reshape(C_out, N, L, V)
        return jnp.transpose(out, (1, 0, 3, 2))               # (N, C_out, V, L)

    else:
        # ---------------- batch-on-lanes layout (small V) --------------------
        V_pad = _round_up(V, 8)                               # sublane alignment
        a_pad = jnp.zeros((V_pad, V_pad), jnp.float32).at[:V, :V].set(a_eff)
        a_op = a_pad.astype(compute_dtype)                    # A_eff (not transposed)

        def fits(tb):
            xb_b = 2 * C_in * V_pad * tb * io_bytes
            ob_b = 2 * C_out * V_pad * tb * out_bytes
            ab_b = V_pad * V_pad * a_bytes                    # single-buffered
            tmp = interm_ch * V_pad * tb * 4
            return xb_b + ob_b + ab_b + tmp <= budget

        TB = _pick_tile(B, [4096, 2048, 1024, 512, 256, 128], fits)   # lane-dense tiles
        B_pad = _round_up(B, TB)
        n_i = B_pad // TB

        xb = jnp.transpose(x, (1, 2, 0, 3)).reshape(C_in, V, B).astype(compute_dtype)
        xb = jnp.pad(xb, ((0, 0), (0, V_pad - V), (0, B_pad - B)))

        kernel = functools.partial(_prop_kernel_batch_on_lanes,
                                   c_in=C_in, c_out=C_out, mix_first=mix_first)
        out = pl.pallas_call(
            kernel,
            out_shape=jax.ShapeDtypeStruct((C_out, V_pad, B_pad), out_dtype),
            grid_spec=pltpu.PrefetchScalarGridSpec(
                num_scalar_prefetch=0,
                grid=(n_i,),
                in_specs=[
                    pl.BlockSpec((C_in, V_pad, TB), lambda i: (0, 0, i)),
                    pl.BlockSpec(memory_space=pltpu.MemorySpace.VMEM),   # A_eff, resident once
                    pl.BlockSpec(memory_space=pltpu.MemorySpace.SMEM),   # conv weight
                    pl.BlockSpec(memory_space=pltpu.MemorySpace.SMEM),   # conv bias
                ],
                out_specs=pl.BlockSpec((C_out, V_pad, TB), lambda i: (0, 0, i)),
            ),
            compiler_params=pltpu.CompilerParams(
                dimension_semantics=("parallel",),
                vmem_limit_bytes=vmem_limit,
            ),
        )(xb, a_op, w2, b1)

        out = out[:, :V, :B].reshape(C_out, V, N, L)
        return jnp.transpose(out, (2, 0, 1, 3))               # (N, C_out, V, L)


# ---------------------------------------------------------------------------
# Self-test
# ---------------------------------------------------------------------------
if __name__ == "__main__":
    key = jax.random.PRNGKey(0)

    def reference(x, adj, weight, bias, gdep, alpha):
        """Pure-JAX reference mirroring the PyTorch forward step by step."""
        V = adj.shape[0]
        adj_i = adj + jnp.eye(V, dtype=adj.dtype)
        a = adj_i / adj_i.sum(1, keepdims=True)
        h = x
        for _ in range(gdep):
            h = alpha * x + (1.0 - alpha) * jnp.einsum("ncwl,vw->ncvl", h, a)
        C_out, C_in = weight.shape[0], weight.shape[1]
        return (jnp.einsum("oc,ncvl->novl", weight.reshape(C_out, C_in), h)
                + bias[None, :, None, None])

    configs = [
        # (N, C_in, C_out, V, L, gdep, alpha)
        (2, 4, 3, 16, 8, 2, 0.05),     # small V  -> batch-on-lanes, mix-first path
        (2, 2, 4, 128, 64, 3, 0.1),    # V = 128  -> nodes-on-lanes, fused-dot path
    ]

    for cfg_i, (N, C_in, C_out, V, L, gdep, alpha) in enumerate(configs):
        k1, k2, k3, k4, key = jax.random.split(key, 5)
        x = jax.random.normal(k1, (N, C_in, V, L), dtype=jnp.float32)
        adj = jax.random.uniform(k2, (V, V), dtype=jnp.float32)
        weight = 0.1 * jax.random.normal(k3, (C_out, C_in, 1, 1), dtype=jnp.float32)
        bias = 0.1 * jax.random.normal(k4, (C_out,), dtype=jnp.float32)

        ref = reference(x, adj, weight, bias, gdep, alpha)

        # Exact-precision path (f32 MXU operands): tight tolerance.
        out_f32 = prop_forward(x, adj, weight, bias, gdep=gdep, alpha=alpha,
                               compute_dtype=jnp.float32)
        jax.block_until_ready(out_f32)
        assert out_f32.shape == (N, C_out, V, L)
        assert jnp.allclose(out_f32, ref, rtol=5e-4, atol=5e-4), (
            cfg_i, "f32", float(jnp.max(jnp.abs(out_f32 - ref))))

        # Fast path (bf16 activations / A_eff, f32 accumulation): looser tolerance.
        out_bf16 = prop_forward(x, adj, weight, bias, gdep=gdep, alpha=alpha,
                                compute_dtype=jnp.bfloat16)
        jax.block_until_ready(out_bf16)
        assert out_bf16.shape == (N, C_out, V, L)
        assert jnp.allclose(out_bf16, ref, rtol=6e-2, atol=6e-2), (
            cfg_i, "bf16", float(jnp.max(jnp.abs(out_bf16 - ref))))

    print("KERNEL_OK")
</pallas_src>

<mosaic_0001>
module attributes {stable_mosaic.version = 11 : i64} {
  func.func @_prop_kernel_batch_on_lanes(%arg0: i32, %arg1: memref<4x16x128xf32, #tpu.memory_space<vmem>>, %arg2: memref<16x16xf32, #tpu.memory_space<vmem>>, %arg3: memref<3x4xf32, #tpu.memory_space<smem>>, %arg4: memref<3xf32, #tpu.memory_space<smem>>, %arg5: memref<3x16x128xf32, #tpu.memory_space<vmem>>) attributes {dimension_semantics = [#tpu.dimension_semantics<parallel>], iteration_bounds = array<i64: 1>, scalar_prefetch = 0 : i64, scratch_operands = 0 : i64, tpu.core_type = #tpu.core_type<tc>, window_params = [{transform_indices = @transform_0, window_bounds = array<i64: 4, 16, 128>}, {pipeline_mode = #tpu.pipeline_mode<synchronous>, transform_indices = @transform_1, window_bounds = array<i64: 16, 16>}, {transform_indices = @transform_2, window_bounds = array<i64: 3, 4>}, {transform_indices = @transform_3, window_bounds = array<i64: 3>}, {transform_indices = @transform_4, window_bounds = array<i64: 3, 16, 128>}]} {
    %c0 = arith.constant 0 : index
    %c0_0 = arith.constant 0 : index
    %0 = vector.load %arg2[%c0, %c0_0] : memref<16x16xf32, #tpu.memory_space<vmem>>, vector<16x16xf32>
    %c0_1 = arith.constant 0 : index
    %c0_2 = arith.constant 0 : index
    %c0_3 = arith.constant 0 : index
    %1 = vector.load %arg1[%c0_1, %c0_2, %c0_3] : memref<4x16x128xf32, #tpu.memory_space<vmem>>, vector<1x16x128xf32>
    %2 = vector.shape_cast %1 : vector<1x16x128xf32> to vector<16x128xf32>
    %c1 = arith.constant 1 : index
    %c0_4 = arith.constant 0 : index
    %c0_5 = arith.constant 0 : index
    %3 = vector.load %arg1[%c1, %c0_4, %c0_5] : memref<4x16x128xf32, #tpu.memory_space<vmem>>, vector<1x16x128xf32>
    %4 = vector.shape_cast %3 : vector<1x16x128xf32> to vector<16x128xf32>
    %c2 = arith.constant 2 : index
    %c0_6 = arith.constant 0 : index
    %c0_7 = arith.constant 0 : index
    %5 = vector.load %arg1[%c2, %c0_6, %c0_7] : memref<4x16x128xf32, #tpu.memory_space<vmem>>, vector<1x16x128xf32>
    %6 = vector.shape_cast %5 : vector<1x16x128xf32> to vector<16x128xf32>
    %c3 = arith.constant 3 : index
    %c0_8 = arith.constant 0 : index
    %c0_9 = arith.constant 0 : index
    %7 = vector.load %arg1[%c3, %c0_8, %c0_9] : memref<4x16x128xf32, #tpu.memory_space<vmem>>, vector<1x16x128xf32>
    %8 = vector.shape_cast %7 : vector<1x16x128xf32> to vector<16x128xf32>
    %c0_10 = arith.constant 0 : index
    %c0_11 = arith.constant 0 : index
    %9 = memref.load %arg3[%c0_10, %c0_11] : memref<3x4xf32, #tpu.memory_space<smem>>
    %10 = vector.broadcast %9 : f32 to vector<16x128xf32>
    %11 = arith.mulf %2, %10 : vector<16x128xf32>
    %c0_12 = arith.constant 0 : index
    %c1_13 = arith.constant 1 : index
    %12 = memref.load %arg3[%c0_12, %c1_13] : memref<3x4xf32, #tpu.memory_space<smem>>
    %13 = vector.broadcast %12 : f32 to vector<16x128xf32>
    %14 = arith.mulf %4, %13 : vector<16x128xf32>
    %15 = arith.addf %11, %14 : vector<16x128xf32>
    %c0_14 = arith.constant 0 : index
    %c2_15 = arith.constant 2 : index
    %16 = memref.load %arg3[%c0_14, %c2_15] : memref<3x4xf32, #tpu.memory_space<smem>>
    %17 = vector.broadcast %16 : f32 to vector<16x128xf32>
    %18 = arith.mulf %6, %17 : vector<16x128xf32>
    %19 = arith.addf %15, %18 : vector<16x128xf32>
    %c0_16 = arith.constant 0 : index
    %c3_17 = arith.constant 3 : index
    %20 = memref.load %arg3[%c0_16, %c3_17] : memref<3x4xf32, #tpu.memory_space<smem>>
    %21 = vector.broadcast %20 : f32 to vector<16x128xf32>
    %22 = arith.mulf %8, %21 : vector<16x128xf32>
    %23 = arith.addf %19, %22 : vector<16x128xf32>
    %cst = arith.constant dense<0.000000e+00> : vector<16x128xf32>
    %24 = tpu.matmul %0, %23, %cst {dimension_numbers = #tpu.dot_dimension_numbers<[1], [0], [0], [1], [0, 0, 1, 1], [], []>} : vector<16x16xf32>, vector<16x128xf32>, vector<16x128xf32> -> vector<16x128xf32>
    %c0_18 = arith.constant 0 : index
    %25 = memref.load %arg4[%c0_18] : memref<3xf32, #tpu.memory_space<smem>>
    %26 = vector.broadcast %25 : f32 to vector<16x128xf32>
    %27 = arith.addf %24, %26 : vector<16x128xf32>
    %c0_19 = arith.constant 0 : index
    %c0_20 = arith.constant 0 : index
    %c0_21 = arith.constant 0 : index
    %28 = vector.load %arg5[%c0_19, %c0_20, %c0_21] : memref<3x16x128xf32, #tpu.memory_space<vmem>>, vector<1x16x128xf32>
    %29 = vector.shape_cast %28 : vector<1x16x128xf32> to vector<16x128xf32>
    %30 = vector.shape_cast %27 : vector<16x128xf32> to vector<1x16x128xf32>
    tpu.vector_store %arg5[%c0_19, %c0_20, %c0_21], %30 {strides = array<i32>} : memref<3x16x128xf32, #tpu.memory_space<vmem>>, vector<1x16x128xf32>,
    %c1_22 = arith.constant 1 : index
    %c0_23 = arith.constant 0 : index
    %31 = memref.load %arg3[%c1_22, %c0_23] : memref<3x4xf32, #tpu.memory_space<smem>>
    %32 = vector.broadcast %31 : f32 to vector<16x128xf32>
    %33 = arith.mulf %2, %32 : vector<16x128xf32>
    %c1_24 = arith.constant 1 : index
    %c1_25 = arith.constant 1 : index
    %34 = memref.load %arg3[%c1_24, %c1_25] : memref<3x4xf32, #tpu.memory_space<smem>>
    %35 = vector.broadcast %34 : f32 to vector<16x128xf32>
    %36 = arith.mulf %4, %35 : vector<16x128xf32>
    %37 = arith.addf %33, %36 : vector<16x128xf32>
    %c1_26 = arith.constant 1 : index
    %c2_27 = arith.constant 2 : index
    %38 = memref.load %arg3[%c1_26, %c2_27] : memref<3x4xf32, #tpu.memory_space<smem>>
    %39 = vector.broadcast %38 : f32 to vector<16x128xf32>
    %40 = arith.mulf %6, %39 : vector<16x128xf32>
    %41 = arith.addf %37, %40 : vector<16x128xf32>
    %c1_28 = arith.constant 1 : index
    %c3_29 = arith.constant 3 : index
    %42 = memref.load %arg3[%c1_28, %c3_29] : memref<3x4xf32, #tpu.memory_space<smem>>
    %43 = vector.broadcast %42 : f32 to vector<16x128xf32>
    %44 = arith.mulf %8, %43 : vector<16x128xf32>
    %45 = arith.addf %41, %44 : vector<16x128xf32>
    %cst_30 = arith.constant dense<0.000000e+00> : vector<16x128xf32>
    %46 = tpu.matmul %0, %45, %cst_30 {dimension_numbers = #tpu.dot_dimension_numbers<[1], [0], [0], [1], [0, 0, 1, 1], [], []>} : vector<16x16xf32>, vector<16x128xf32>, vector<16x128xf32> -> vector<16x128xf32>
    %c1_31 = arith.constant 1 : index
    %47 = memref.load %arg4[%c1_31] : memref<3xf32, #tpu.memory_space<smem>>
    %48 = vector.broadcast %47 : f32 to vector<16x128xf32>
    %49 = arith.addf %46, %48 : vector<16x128xf32>
    %c1_32 = arith.constant 1 : index
    %c0_33 = arith.constant 0 : index
    %c0_34 = arith.constant 0 : index
    %50 = vector.load %arg5[%c1_32, %c0_33, %c0_34] : memref<3x16x128xf32, #tpu.memory_space<vmem>>, vector<1x16x128xf32>
    %51 = vector.shape_cast %50 : vector<1x16x128xf32> to vector<16x128xf32>
    %52 = vector.shape_cast %49 : vector<16x128xf32> to vector<1x16x128xf32>
    tpu.vector_store %arg5[%c1_32, %c0_33, %c0_34], %52 {strides = array<i32>} : memref<3x16x128xf32, #tpu.memory_space<vmem>>, vector<1x16x128xf32>,
    %c2_35 = arith.constant 2 : index
    %c0_36 = arith.constant 0 : index
    %53 = memref.load %arg3[%c2_35, %c0_36] : memref<3x4xf32, #tpu.memory_space<smem>>
    %54 = vector.broadcast %53 : f32 to vector<16x128xf32>
    %55 = arith.mulf %2, %54 : vector<16x128xf32>
    %c2_37 = arith.constant 2 : index
    %c1_38 = arith.constant 1 : index
    %56 = memref.load %arg3[%c2_37, %c1_38] : memref<3x4xf32, #tpu.memory_space<smem>>
    %57 = vector.broadcast %56 : f32 to vector<16x128xf32>
    %58 = arith.mulf %4, %57 : vector<16x128xf32>
    %59 = arith.addf %55, %58 : vector<16x128xf32>
    %c2_39 = arith.constant 2 : index
    %c2_40 = arith.constant 2 : index
    %60 = memref.load %arg3[%c2_39, %c2_40] : memref<3x4xf32, #tpu.memory_space<smem>>
    %61 = vector.broadcast %60 : f32 to vector<16x128xf32>
    %62 = arith.mulf %6, %61 : vector<16x128xf32>
    %63 = arith.addf %59, %62 : vector<16x128xf32>
    %c2_41 = arith.constant 2 : index
    %c3_42 = arith.constant 3 : index
    %64 = memref.load %arg3[%c2_41, %c3_42] : memref<3x4xf32, #tpu.memory_space<smem>>
    %65 = vector.broadcast %64 : f32 to vector<16x128xf32>
    %66 = arith.mulf %8, %65 : vector<16x128xf32>
    %67 = arith.addf %63, %66 : vector<16x128xf32>
    %cst_43 = arith.constant dense<0.000000e+00> : vector<16x128xf32>
    %68 = tpu.matmul %0, %67, %cst_43 {dimension_numbers = #tpu.dot_dimension_numbers<[1], [0], [0], [1], [0, 0, 1, 1], [], []>} : vector<16x16xf32>, vector<16x128xf32>, vector<16x128xf32> -> vector<16x128xf32>
    %c2_44 = arith.constant 2 : index
    %69 = memref.load %arg4[%c2_44] : memref<3xf32, #tpu.memory_space<smem>>
    %70 = vector.broadcast %69 : f32 to vector<16x128xf32>
    %71 = arith.addf %68, %70 : vector<16x128xf32>
    %c2_45 = arith.constant 2 : index
    %c0_46 = arith.constant 0 : index
    %c0_47 = arith.constant 0 : index
    %72 = vector.load %arg5[%c2_45, %c0_46, %c0_47] : memref<3x16x128xf32, #tpu.memory_space<vmem>>, vector<1x16x128xf32>
    %73 = vector.shape_cast %72 : vector<1x16x128xf32> to vector<16x128xf32>
    %74 = vector.shape_cast %71 : vector<16x128xf32> to vector<1x16x128xf32>
    tpu.vector_store %arg5[%c2_45, %c0_46, %c0_47], %74 {strides = array<i32>} : memref<3x16x128xf32, #tpu.memory_space<vmem>>, vector<1x16x128xf32>,
    return
  }
  func.func @transform_0(%arg0: i32) -> (i32, i32, i32) {
    %c0_i32 = arith.constant 0 : i32
    %c0_i32_0 = arith.constant 0 : i32
    %c0_i32_1 = arith.constant 0 : i32
    return %c0_i32, %c0_i32_0, %arg0 : i32, i32, i32
  }
  func.func @transform_1(%arg0: i32) -> (i32, i32) {
    %c0_i32 = arith.constant 0 : i32
    %c0_i32_0 = arith.constant 0 : i32
    %c0_i32_1 = arith.constant 0 : i32
    return %c0_i32, %c0_i32_0 : i32, i32
  }
  func.func @transform_2(%arg0: i32) -> (i32, i32) {
    %c0_i32 = arith.constant 0 : i32
    %c0_i32_0 = arith.constant 0 : i32
    %c0_i32_1 = arith.constant 0 : i32
    return %c0_i32, %c0_i32_0 : i32, i32
  }
  func.func @transform_3(%arg0: i32) -> i32 {
    %c0_i32 = arith.constant 0 : i32
    %c0_i32_0 = arith.constant 0 : i32
    return %c0_i32 : i32
  }
  func.func @transform_4(%arg0: i32) -> (i32, i32, i32) {
    %c0_i32 = arith.constant 0 : i32
    %c0_i32_0 = arith.constant 0 : i32
    %c0_i32_1 = arith.constant 0 : i32
    return %c0_i32, %c0_i32_0, %arg0 : i32, i32, i32
  }
}

</mosaic_0001>

<bundles_post_ra>
// kernel: tpu_custom_call.1
= control target key start
LH: loop header
LB: loop body
LE: loop exit
PB: predicated region body
PF: predicated region fallthrough
CT: control target
= control target key end

     0   :  { %9 = vsyncpa [#allocation3], 0  ;;  %s654_s0 = inlined_call_operand.hbm [shape: f32[4,16,128], index: 0, kind: input, shape index: {}]   ;;  %s655_s1 = inlined_call_operand.hbm [shape: f32[16,16], index: 1, kind: input, shape index: {}]   ;;  %s656_s2 = inlined_call_operand.hbm [shape: f32[3,4], index: 2, kind: input, shape index: {}]   ;;  %s657_s3 = inlined_call_operand.vmem [shape: f32[3], index: 3, kind: input, shape index: {}]   ;;  %s658_s4 = inlined_call_operand.hbm [shape: f32[3,16,128], index: 4, kind: output, shape index: {}]  }
   0x1   :  { %10 = vsyncpa [#allocation8], 0 }
   0x2   :  { %11 = vsyncpa [#allocation5], 0 }
   0x3   :  { %12 = vsyncpa [#allocation6], 0 }
   0x4   :  { %13 = vsyncpa [#allocation4], 0  ;;  %s563_s15 = smov [#allocation2]  }
   0x5   :  { %s19_s16 = sshll.u32 %s563_s15, 4  ;;  %s20_s16 = int_to_ptr.vmem [resolvable:$true] %s19_s16 }
   0x6   :  { %s481_s17 = scalar_lea.vmem %s20_s16, 1024  ;;  %p486_p1 = scmp.lt.s32.totalorder %s20_s16, %s20_s16 }
   0x7   :  { %p482_p0 = scmp.ne.s32.totalorder %s20_s16, %s481_s17  ;;  %p487_p2 = scmp.lt.s32.totalorder %s481_s17, %s481_s17 }
   0x9   :  { %p488_p3 = por %p487_p2, %p486_p1 }
   0xb   :  { %p489_p4 = pnand %p488_p3, %p482_p0 }
   0xd   :  { %492 = shalt.err (!%p489_p4)
}
   0xe   :  { %s564_s18 = smov 128   ;;  %s565_s19 = smov 8  }
   0xf   :  { %25 = dma.hbm_to_vmem [thread:$0]  %s654_s0, 1024, %s20_s16, [#allocation3], %s564_s18, %s564_s18, %s565_s19  }
  0x10   :  { %s566_s22 = smov [#allocation7]   ;;  %s52_s26 = sshll.u32 %s657_s3, 4  ;;  %s53_s26 = int_to_ptr.vmem [resolvable:$true] %s52_s26 }
  0x11   :  { %s31_s23 = sshll.u32 %s566_s22, 4  ;;  %s32_s23 = int_to_ptr.vmem [resolvable:$true] %s31_s23 }
  0x12   :  { %s501_s27 = scalar_lea.vmem %s32_s23, 256  ;;  %p506_p6 = scmp.lt.s32.totalorder %s32_s23, %s32_s23 }
  0x13   :  { %p502_p5 = scmp.ne.s32.totalorder %s32_s23, %s501_s27  ;;  %p507_p7 = scmp.lt.s32.totalorder %s501_s27, %s501_s27 }
  0x15   :  { %p508_p8 = por %p507_p7, %p506_p6 }
  0x17   :  { %p509_p9 = pnand %p508_p8, %p502_p5 }
  0x19   :  { %512 = shalt.err (!%p509_p9)
}
  0x1a   :  { %37 = dma.hbm_to_vmem [thread:$0]  %s655_s1, 256, %s32_s23, [#allocation8], %s564_s18, %s564_s18, %s565_s19  }
  0x1b   :  { %s567_s0 = smov [#allocation9]   ;;  %s521_s3 = scalar_lea.vmem %s53_s26, 16 }
  0x1c   :  { %45 = dma.hbm_to_smem %s656_s2, 64, %s567_s0, [#allocation5]  }
  0x1d   :  { %p522_p10 = scmp.ne.s32.totalorder %s53_s26, %s521_s3  ;;  %p526_p11 = scmp.lt.s32.totalorder %s53_s26, %s53_s26 }
  0x1e   :  { %p527_p12 = scmp.lt.s32.totalorder %s521_s3, %s521_s3 }
  0x20   :  { %p528_p13 = por %p527_p12, %p526_p11 }
  0x22   :  { %p529_p0 = pnand %p528_p13, %p522_p10 }
  0x24   :  { %532 = shalt.err (!%p529_p0)
}
  0x25   :  { %s568_s6 = smov [#allocation10]  }
  0x26   :  { %55 = dma.vmem_to_smem %s53_s26, 16, %s568_s6, [#allocation6]  }
  0x27   :  { %553 = dma.done.wait [#allocation3], 1024  }
  0x28   :  { %554 = vsyncadd [#allocation3], 4294966272 }
  0x29   :  { %555 = dma.done.wait [#allocation8], 256  }
  0x2a   :  { %556 = vsyncadd [#allocation8], 4294967040 }
  0x2b   :  { %557 = dma.done.wait [#allocation5], 64  }
  0x2c   :  { %558 = vsyncadd [#allocation5], 4294967232 }
  0x2d   :  { %559 = dma.done.wait [#allocation6], 16  }
  0x2e   :  { %560 = vsyncadd [#allocation6], 4294967280 }
  0x2f   :  { %68 = sfence }
  0x30   :  { %s82_s1 = sld [smem:[#allocation9]]  ;;  %vm106_vm0 = vcmask 130048   ;;  %v613_v0 = vld [vmem:[#allocation7] sm:$0xff]  ;;  %v72_v2 = vld [vmem:[#allocation2 + $0x8] sm:$0xff]  ;;  %v74_v3 = vld [vmem:[#allocation2 + $0x10] sm:$0xff]  ;;  %s569_s22 = smov [#allocation11]  }
  0x31   :  { %s414_s2 = sld [smem:[#allocation9 + $0x1]]  ;;  %449 = vmatprep.mubr.msk.f32.mxu0 %vm106_vm0, %v613_v0  ;;  %456 = vmatprep.mubr.msk.f32.mxu1 %vm106_vm0, %v613_v0  ;;  %v71_v1 = vld [vmem:[#allocation2] sm:$0xff]  ;;  %v75_v4 = vld [vmem:[#allocation2 + $0x18] sm:$0xff]  ;;  %v78_v6 = vld [vmem:[#allocation2 + $0x28] sm:$0xff]  ;;  %s399_s23 = sshll.u32 %s569_s22, 4  ;;  %s400_s23 = int_to_ptr.vmem [resolvable:$true] %s399_s23 }
  0x32   :  { %s415_s7 = sld [smem:[#allocation9 + $0x2]]  ;;  %v77_v5 = vld [vmem:[#allocation2 + $0x20] sm:$0xff]  ;;  %v80_v8 = vld [vmem:[#allocation2 + $0x30] sm:$0xff]  ;;  %v81_v9 = vld [vmem:[#allocation2 + $0x38] sm:$0xff]  ;;  %s533_s24 = scalar_lea.vmem %s400_s23, 768 }
  0x33   :  { %s416_s8 = sld [smem:[#allocation9 + $0x3]]  ;;  %v70_v46 = vld [vmem:[#allocation7 + $0x8] sm:$0xff]  ;;  %p534_p1 = scmp.ne.s32.totalorder %s400_s23, %s533_s24 }
  0x34   :  { %s619_s9 = sld [smem:[#allocation9 + $0x80]]  ;;  %p538_p2 = scmp.lt.s32.totalorder %s400_s23, %s400_s23 }
  0x35   :  { %s621_s10 = sld [smem:[#allocation9 + $0x81]]  ;;  %p539_p3 = scmp.lt.s32.totalorder %s533_s24, %s533_s24 }
  0x36   :  { %v83_v7 = vstv %s82_s1  ;;  %s623_s11 = sld [smem:[#allocation9 + $0x82]] }
  0x37   :  { %v84_v10 = vmul.f32 %v83_v7, %v71_v1  ;;  %v85_v11 = vmul.f32 %v83_v7, %v72_v2  ;;  %v87_v12 = vstv %s414_s2  ;;  %s625_s12 = sld [smem:[#allocation9 + $0x83]]  ;;  %p540_p4 = por %p539_p3, %p538_p2 }
  0x38   :  { %v88_v13 = vmul.f32 %v87_v12, %v74_v3  ;;  %v89_v14 = vmul.f32 %v87_v12, %v75_v4  ;;  %v93_v15 = vstv %s415_s7  ;;  %s627_s13 = sld [smem:[#allocation9 + $0x100]] }
  0x39   :  { %v94_v16 = vmul.f32 %v93_v15, %v77_v5  ;;  %v95_v17 = vmul.f32 %v93_v15, %v78_v6  ;;  %v99_v18 = vstv %s416_s8  ;;  %s629_s14 = sld [smem:[#allocation9 + $0x101]]  ;;  %p541_p5 = pnand %p540_p4, %p534_p1 }
  0x3a   :  { %v91_v19 = vadd.f32 %v89_v14, %v85_v11  ;;  %v100_v20 = vmul.f32 %v99_v18, %v80_v8  ;;  %v101_v21 = vmul.f32 %v99_v18, %v81_v9  ;;  %v90_v22 = vadd.f32 %v88_v13, %v84_v10  ;;  %s631_s15 = sld [smem:[#allocation9 + $0x102]] }
  0x3b   :  { %v191_v23 = vstv %s619_s9  ;;  %v195_v24 = vstv %s621_s10  ;;  %s635_s16 = sld [smem:[#allocation9 + $0x103]] }
  0x3c   :  { %v97_v25 = vadd.f32 %v95_v17, %v91_v19  ;;  %v96_v26 = vadd.f32 %v94_v16, %v90_v22  ;;  %v192_v27 = vmul.f32 %v191_v23, %v71_v1  ;;  %v193_v28 = vmul.f32 %v191_v23, %v72_v2  ;;  %s104_s17 = sld [smem:[#allocation10]] }
  0x3d   :  { %v196_v29 = vmul.f32 %v195_v24, %v74_v3  ;;  %v197_v30 = vmul.f32 %v195_v24, %v75_v4  ;;  %v201_v31 = vstv %s623_s11  ;;  %v207_v32 = vstv %s625_s12  ;;  %s423_s20 = sld [smem:[#allocation10 + $0x1]] }
  0x3e   :  { %v103_v33 = vadd.f32 %v101_v21, %v97_v25  ;;  %v102_v34 = vadd.f32 %v100_v20, %v96_v26  ;;  %v202_v35 = vmul.f32 %v201_v31, %v77_v5  ;;  %v203_v36 = vmul.f32 %v201_v31, %v78_v6  ;;  %s430_s21 = sld [smem:[#allocation10 + $0x2]] }
  0x3f   :  { %v199_v37 = vadd.f32 %v197_v30, %v193_v28  ;;  %v208_v38 = vmul.f32 %v207_v32, %v80_v8  ;;  %v209_v39 = vmul.f32 %v207_v32, %v81_v9  ;;  %v293_v40 = vstv %s627_s13 }
  0x40   :  { %445 = vmatprep.subr.mxu0 %v103_v33  ;;  %v295_v41 = vmul.f32 %v293_v40, %v72_v2  ;;  %v297_v42 = vstv %s629_s14  ;;  %v303_v43 = vstv %s631_s15  ;;  %v198_v44 = vadd.f32 %v196_v29, %v192_v27 }
  0x41   :  { %446 = vmatpush3.msra.mxu0 %v103_v33  ;;  %v205_v45 = vadd.f32 %v203_v36, %v199_v37  ;;  %v299_v47 = vmul.f32 %v297_v42, %v75_v4  ;;  %v305_v48 = vmul.f32 %v303_v43, %v78_v6  ;;  %v309_v49 = vstv %s635_s16 }
  0x42   :  { %447 = vmatprep.subr.mxu0 %v102_v34  ;;  %v204_v50 = vadd.f32 %v202_v35, %v198_v44  ;;  %v294_v51 = vmul.f32 %v293_v40, %v71_v1  ;;  %v298_v52 = vmul.f32 %v297_v42, %v74_v3  ;;  %v311_v55 = vmul.f32 %v309_v49, %v81_v9 }
  0x43   :  { %448 = vmatpush3.msra.mxu0 %v102_v34  ;;  %v211_v53 = vadd.f32 %v209_v39, %v205_v45  ;;  %v301_v54 = vadd.f32 %v299_v47, %v295_v41  ;;  %v304_v56 = vmul.f32 %v303_v43, %v77_v5  ;;  %v310_v59 = vmul.f32 %v309_v49, %v80_v8 }
  0x44   :  { %450 = vmatmul.mubr.msk.f32.vlgmr.msra.gmra.mxu0 %vm106_vm0, %v70_v46  ;;  %v210_v57 = vadd.f32 %v208_v38, %v204_v50  ;;  %v300_v58 = vadd.f32 %v298_v52, %v294_v51  ;;  %v105_v1 = vstv %s104_s17  ;;  %v213_v5 = vstv %s423_s20 }
  0x45   :  { %452 = vmatprep.subr.mxu1 %v211_v53  ;;  %v307_v60 = vadd.f32 %v305_v48, %v301_v54  ;;  %463 = vmatprep.mubr.msk.f32.mxu0 %vm106_vm0, %v613_v0  ;;  %v315_v8 = vstv %s430_s21 }
  0x46   :  { %453 = vmatpush3.msra.mxu1 %v211_v53  ;;  %v306_v61 = vadd.f32 %v304_v56, %v300_v58 }
  0x47   :  { %v313_v62 = vadd.f32 %v311_v55, %v307_v60  ;;  %454 = vmatprep.subr.mxu1 %v210_v57 }
  0x48   :  { %455 = vmatpush3.msra.mxu1 %v210_v57  ;;  %v312_v63 = vadd.f32 %v310_v59, %v306_v61 }
  0x49   :  { %459 = vmatprep.subr.mxu0 %v313_v62  ;;  %457 = vmatmul.mubr.msk.f32.vlgmr.msra.gmra.mxu1 %vm106_vm0, %v70_v46 }
  0x4a   :  { %460 = vmatpush3.msra.mxu0 %v313_v62 }
  0x4b   :  { %461 = vmatprep.subr.mxu0 %v312_v63 }
  0x4c   :  { %462 = vmatpush3.msra.mxu0 %v312_v63 }
  0x4d   :  { %464 = vmatmul.mubr.msk.f32.vlgmr.msra.gmra.mxu0 %vm106_vm0, %v70_v46 }
 0x104   :  { %v451_v2 = vpop.f32.mrf.mxu0 }
 0x105   :  { %v185_v0 = vadd.f32 %v451_v2, %v105_v1 }
 0x106   :  { %v179_v3 = vpop.f32.mrf.mxu0 }
 0x107   :  { %189 = vst [vmem:[#allocation11 + $0x8] sm:$0xff] %v185_v0  ;;  %v180_v4 = vadd.f32 %v179_v3, %v105_v1 }
 0x109   :  { %188 = vst [vmem:[#allocation11] sm:$0xff] %v180_v4  ;;  %v458_v6 = vpop.f32.mrf.mxu1 }
 0x10a   :  { %v286_v7 = vadd.f32 %v458_v6, %v213_v5 }
 0x10b   :  { %v280_v9 = vpop.f32.mrf.mxu1 }
 0x10c   :  { %291 = vst [vmem:[#allocation11 + $0x18] sm:$0xff] %v286_v7  ;;  %v281_v10 = vadd.f32 %v280_v9, %v213_v5 }
 0x10d   :  { %v465_v11 = vpop.f32.mrf.mxu0 }
 0x10e   :  { %v388_v12 = vadd.f32 %v465_v11, %v315_v8  ;;  %290 = vst [vmem:[#allocation11 + $0x10] sm:$0xff] %v281_v10 }
 0x10f   :  { %v382_v13 = vpop.f32.mrf.mxu0 }
 0x110   :  { %393 = vst [vmem:[#allocation11 + $0x28] sm:$0xff] %v388_v12  ;;  %v383_v14 = vadd.f32 %v382_v13, %v315_v8 }
 0x112   :  { %392 = vst [vmem:[#allocation11 + $0x20] sm:$0xff] %v383_v14 }
 0x113   :  { %544 = shalt.err (!%p541_p5)
}
 0x114   :  { %405 = dma.vmem_to_hbm [thread:$0]  %s400_s23, 768, %s658_s4, [#allocation4], %s564_s18, %s564_s18, %s565_s19  }
 0x115   :  { %561 = dma.done.wait [#allocation4], 768  }
 0x116   :  { %562 = vsyncadd [#allocation4], 4294966528 }
 0x117   :  { %409 = vsyncpa [#allocation3], 1 }
 0x118   :  { %410 = vsyncpa [#allocation8], 1 }
 0x119   :  { %411 = vsyncpa [#allocation4], 1 }
 0x11a   :  { %412 = vsyncpa [#allocation5], 1 }
 0x11b   :  { %413 = vsyncpa [#allocation6], 1 }

</bundles_post_ra>
